<compile_context>
chip_gen: v7x
topology: tpu7x:2x2x1
jax: 0.10.0
libtpu: 0.0.40
codegen_flags: <defaults>
</compile_context>

<pallas_src>
import jax
import jax.numpy as jnp
from jax.experimental import pallas as pl
from jax.experimental.pallas import tpu as pltpu

# ----- problem sizes (small, consistent with the module's forward) -----
B, C, H, W = 2, 4, 16, 16          # NCHW input
F = C * H * W                      # 1024 flattened features
HID = 128                          # hidden width of synthetic inner model
D = 128                            # embedding dim
K = 8                              # number of class centers
K_PAD = 128                        # lane-dense padded center count
MIN_VAL = -1.0                     # self.min
MAX_VAL = 1.0                      # self.max


def rescale_dist_kernel(x_ref, w1_ref, b1_ref, w2_ref, b2_ref, ct2_ref, csq_ref, out_ref):
    # Input is already bf16 and the rescale is folded into (w1, b1) by the wrapper.
    x = x_ref[...]                                                        # [BT, F] bf16

    # inner model: two-layer MLP -> embedding z (bf16 MXU matmuls, f32 accumulate)
    h = jnp.dot(x, w1_ref[...], preferred_element_type=jnp.float32) + b1_ref[...]
    h = jnp.maximum(h, 0.0)                                               # f32 VPU (v5e-safe)
    z = jnp.dot(h.astype(jnp.bfloat16), w2_ref[...],
                preferred_element_type=jnp.float32) + b2_ref[...]         # [BT, D] f32

    # -||z - c_k||^2 = (2 c_k).z - ||z||^2 - ||c_k||^2 ; factor 2 pre-folded into ct2
    z_sq = jnp.sum(z * z, axis=-1, keepdims=True)                         # [BT, 1] f32
    cross2 = jnp.dot(z.astype(jnp.bfloat16), ct2_ref[...],
                     preferred_element_type=jnp.float32)                  # [BT, K_PAD] f32
    out_ref[...] = cross2 - z_sq - csq_ref[...]                           # lane-dense store


def prepare_params(w1, b1, w2, b2, centers):
    """One-time host-side transform: fold rescale, pre-transpose & scale centers."""
    scale = MAX_VAL - MIN_VAL
    w1_fold = (scale * w1).astype(jnp.bfloat16)                           # [F, HID] bf16
    # Fold bias from the *rounded* weights actually multiplied by the kernel:
    # b1' = b1 + MIN * sum(W1_used, 0), W1_used = w1_fold / scale (exact for scale=2).
    b1_fold = (b1 + MIN_VAL * (jnp.sum(w1_fold.astype(jnp.float32), axis=0,
                                       keepdims=True) / scale)).astype(jnp.float32)
    w2_bf = w2.astype(jnp.bfloat16)                                       # [HID, D] bf16
    b2_f = b2.astype(jnp.float32)
    # 2*centers^T padded to 128 lanes (bf16); ||c||^2 as an f32 [1, K_PAD] row.
    ct2 = (jnp.zeros((D, K_PAD), jnp.float32)
           .at[:, :K].set(2.0 * centers.T)).astype(jnp.bfloat16)
    c_sq = jnp.zeros((1, K_PAD), jnp.float32).at[:, :K].set(
        jnp.sum(centers * centers, axis=-1)[None, :])
    return w1_fold, b1_fold, w2_bf, b2_f, ct2, c_sq


def model_for_rescale(x_nchw, w1_fold, b1_fold, w2_bf, b2, ct2, c_sq):
    bx = x_nchw.shape[0]
    x2d = x_nchw.reshape(bx, -1).astype(jnp.bfloat16)                     # bf16 input DMA

    # Batch tile: multiple of 8 sublanes; larger tiles once callers batch the attack loop.
    if bx >= 256:
        bt = 256          # fills v6e's 2x256 MXU rows; fine on v5e/v7x
    elif bx >= 128:
        bt = 128
    else:
        bt = 8            # unmasked sublane loads/stores even at tiny B
    b_pad = ((bx + bt - 1) // bt) * bt
    if b_pad != bx:
        x2d = jnp.pad(x2d, ((0, b_pad - bx), (0, 0)))

    cost = pl.CostEstimate(
        flops=2 * b_pad * (F * HID + HID * D + D * K_PAD),
        transcendentals=0,
        bytes_accessed=(x2d.size * 2 + w1_fold.size * 2 + w2_bf.size * 2 + ct2.size * 2
                        + b1_fold.size * 4 + b2.size * 4 + c_sq.size * 4
                        + b_pad * K_PAD * 4),
    )

    out_pad = pl.pallas_call(
        rescale_dist_kernel,
        out_shape=jax.ShapeDtypeStruct((b_pad, K_PAD), jnp.float32),
        grid=(b_pad // bt,),
        in_specs=[
            pl.BlockSpec((bt, F), lambda i: (i, 0)),        # input: tiled over batch
            pl.BlockSpec((F, HID), lambda i: (0, 0)),       # weights / centers: DMA'd once,
            pl.BlockSpec((1, HID), lambda i: (0, 0)),       #   VMEM-resident across the grid
            pl.BlockSpec((HID, D), lambda i: (0, 0)),
            pl.BlockSpec((1, D), lambda i: (0, 0)),
            pl.BlockSpec((D, K_PAD), lambda i: (0, 0)),
            pl.BlockSpec((1, K_PAD), lambda i: (0, 0)),
        ],
        out_specs=pl.BlockSpec((bt, K_PAD), lambda i: (i, 0)),
        compiler_params=pltpu.CompilerParams(
            dimension_semantics=("parallel",),              # both v7x TensorCores at scaled B
        ),
        cost_estimate=cost,
    )(x2d, w1_fold, b1_fold, w2_bf, b2, ct2, c_sq)
    # Padded batch rows and padded center lanes (which hold -||z||^2) are sliced off here.
    return out_pad[:bx, :K]


# ----- references -----
def reference_module(x_nchw, w1, b1, w2, b2, centers):
    """Original module semantics in full f32 (rescale, MLP, -squared-distance)."""
    x2d = x_nchw.reshape(x_nchw.shape[0], -1).astype(jnp.float32)
    r = x2d * (MAX_VAL - MIN_VAL) + MIN_VAL
    h = jnp.maximum(r @ w1 + b1, 0.0)
    z = h @ w2 + b2
    diff = z[:, None, :] - centers[None, :, :]
    return -jnp.sum(diff * diff, axis=-1)


def reference_matched(x_nchw, w1_fold, b1_fold, w2_bf, b2, centers):
    """Same bf16-rounded parameters/activations as the kernel, f32 accumulate,
    distance computed directly as sum((z-c)^2) to validate the expanded form."""
    x2d = x_nchw.reshape(x_nchw.shape[0], -1).astype(jnp.bfloat16)
    h = jnp.maximum(jnp.dot(x2d, w1_fold, preferred_element_type=jnp.float32) + b1_fold, 0.0)
    z = jnp.dot(h.astype(jnp.bfloat16), w2_bf, preferred_element_type=jnp.float32) + b2
    diff = z[:, None, :] - centers[None, :, :]
    return -jnp.sum(diff * diff, axis=-1)


if __name__ == "__main__":
    key = jax.random.PRNGKey(0)
    kx, k1, k2, k3 = jax.random.split(key, 4)

    # deterministic synthetic parameters (no checkpoint loading)
    x = jax.random.uniform(kx, (B, C, H, W), dtype=jnp.float32)          # in [0, 1]
    w1 = jax.random.normal(k1, (F, HID), dtype=jnp.float32) * 0.02
    b1 = jnp.zeros((1, HID), dtype=jnp.float32)
    w2 = jax.random.normal(k2, (HID, D), dtype=jnp.float32) * 0.05
    b2 = jnp.zeros((1, D), dtype=jnp.float32)
    centers = jax.random.normal(k3, (K, D), dtype=jnp.float32)

    w1_f, b1_f, w2_bf, b2_f, ct2, c_sq = prepare_params(w1, b1, w2, b2, centers)

    out = model_for_rescale(x, w1_f, b1_f, w2_bf, b2_f, ct2, c_sq)
    out = jax.block_until_ready(out)
    assert out.shape == (B, K)

    # tight check vs an identically-quantized reference (validates kernel arithmetic
    # and the expanded-distance algebra incl. the bf16 cross term)
    ref_m = reference_matched(x, w1_f, b1_f, w2_bf, b2_f, centers)
    assert jnp.allclose(out, ref_m, rtol=5e-3, atol=2.5e-1), "mismatch vs matched reference"

    # looser check vs the original full-f32 module semantics (slack = bf16 weights/acts)
    ref_f = reference_module(x, w1, b1, w2, b2, centers)
    assert jnp.allclose(out, ref_f, rtol=3e-2, atol=5e-1), "mismatch vs f32 module reference"

    # TODO(synk): the original wrapped `model` is an arbitrary external nn.Module;
    # a synthetic MLP + class-center squared-distance head is used in its place.
    print("KERNEL_OK")
</pallas_src>

<mosaic_0001>
module attributes {stable_mosaic.version = 11 : i64} {
  func.func @rescale_dist_kernel(%arg0: i32, %arg1: memref<8x1024xbf16, #tpu.memory_space<vmem>>, %arg2: memref<1024x128xbf16, #tpu.memory_space<vmem>>, %arg3: memref<1x128xf32, #tpu.memory_space<vmem>>, %arg4: memref<128x128xbf16, #tpu.memory_space<vmem>>, %arg5: memref<1x128xf32, #tpu.memory_space<vmem>>, %arg6: memref<128x128xbf16, #tpu.memory_space<vmem>>, %arg7: memref<1x128xf32, #tpu.memory_space<vmem>>, %arg8: memref<8x128xf32, #tpu.memory_space<vmem>>) attributes {dimension_semantics = [#tpu.dimension_semantics<parallel>], iteration_bounds = array<i64: 1>, scalar_prefetch = 0 : i64, scratch_operands = 0 : i64, tpu.core_type = #tpu.core_type<tc>, window_params = [{transform_indices = @transform_0, window_bounds = array<i64: 8, 1024>}, {pipeline_mode = #tpu.pipeline_mode<synchronous>, transform_indices = @transform_1, window_bounds = array<i64: 1024, 128>}, {pipeline_mode = #tpu.pipeline_mode<synchronous>, transform_indices = @transform_2, window_bounds = array<i64: 1, 128>}, {pipeline_mode = #tpu.pipeline_mode<synchronous>, transform_indices = @transform_3, window_bounds = array<i64: 128, 128>}, {pipeline_mode = #tpu.pipeline_mode<synchronous>, transform_indices = @transform_4, window_bounds = array<i64: 1, 128>}, {pipeline_mode = #tpu.pipeline_mode<synchronous>, transform_indices = @transform_5, window_bounds = array<i64: 128, 128>}, {pipeline_mode = #tpu.pipeline_mode<synchronous>, transform_indices = @transform_6, window_bounds = array<i64: 1, 128>}, {transform_indices = @transform_7, window_bounds = array<i64: 8, 128>}]} {
    %c0 = arith.constant 0 : index
    %c0_0 = arith.constant 0 : index
    %0 = vector.load %arg1[%c0, %c0_0] : memref<8x1024xbf16, #tpu.memory_space<vmem>>, vector<8x1024xbf16>
    %c0_1 = arith.constant 0 : index
    %c0_2 = arith.constant 0 : index
    %1 = vector.load %arg2[%c0_1, %c0_2] : memref<1024x128xbf16, #tpu.memory_space<vmem>>, vector<1024x128xbf16>
    %cst = arith.constant dense<0.000000e+00> : vector<8x128xf32>
    %2 = tpu.matmul %0, %1, %cst {dimension_numbers = #tpu.dot_dimension_numbers<[1], [0], [0], [1], [0, 0, 1, 1], [], []>} : vector<8x1024xbf16>, vector<1024x128xbf16>, vector<8x128xf32> -> vector<8x128xf32>
    %c0_3 = arith.constant 0 : index
    %c0_4 = arith.constant 0 : index
    %3 = vector.load %arg3[%c0_3, %c0_4] : memref<1x128xf32, #tpu.memory_space<vmem>>, vector<1x128xf32>
    %4 = vector.broadcast %3 : vector<1x128xf32> to vector<8x128xf32>
    %5 = arith.addf %2, %4 : vector<8x128xf32>
    %cst_5 = arith.constant 0.000000e+00 : f32
    %6 = vector.broadcast %cst_5 : f32 to vector<8x128xf32>
    %7 = arith.maximumf %5, %6 : vector<8x128xf32>
    %8 = arith.truncf %7 : vector<8x128xf32> to vector<8x128xbf16>
    %c0_6 = arith.constant 0 : index
    %c0_7 = arith.constant 0 : index
    %9 = vector.load %arg4[%c0_6, %c0_7] : memref<128x128xbf16, #tpu.memory_space<vmem>>, vector<128x128xbf16>
    %cst_8 = arith.constant dense<0.000000e+00> : vector<8x128xf32>
    %10 = tpu.matmul %8, %9, %cst_8 {dimension_numbers = #tpu.dot_dimension_numbers<[1], [0], [0], [1], [0, 0, 1, 1], [], []>} : vector<8x128xbf16>, vector<128x128xbf16>, vector<8x128xf32> -> vector<8x128xf32>
    %c0_9 = arith.constant 0 : index
    %c0_10 = arith.constant 0 : index
    %11 = vector.load %arg5[%c0_9, %c0_10] : memref<1x128xf32, #tpu.memory_space<vmem>>, vector<1x128xf32>
    %12 = vector.broadcast %11 : vector<1x128xf32> to vector<8x128xf32>
    %13 = arith.addf %10, %12 : vector<8x128xf32>
    %14 = arith.mulf %13, %13 : vector<8x128xf32>
    %cst_11 = arith.constant dense<0.000000e+00> : vector<8xf32>
    %15 = vector.multi_reduction <add>, %14, %cst_11 [1] : vector<8x128xf32> to vector<8xf32>
    %16 = vector.shape_cast %15 : vector<8xf32> to vector<8x1xf32>
    %17 = arith.truncf %13 : vector<8x128xf32> to vector<8x128xbf16>
    %c0_12 = arith.constant 0 : index
    %c0_13 = arith.constant 0 : index
    %18 = vector.load %arg6[%c0_12, %c0_13] : memref<128x128xbf16, #tpu.memory_space<vmem>>, vector<128x128xbf16>
    %cst_14 = arith.constant dense<0.000000e+00> : vector<8x128xf32>
    %19 = tpu.matmul %17, %18, %cst_14 {dimension_numbers = #tpu.dot_dimension_numbers<[1], [0], [0], [1], [0, 0, 1, 1], [], []>} : vector<8x128xbf16>, vector<128x128xbf16>, vector<8x128xf32> -> vector<8x128xf32>
    %20 = vector.broadcast %16 : vector<8x1xf32> to vector<8x128xf32>
    %21 = arith.subf %19, %20 : vector<8x128xf32>
    %c0_15 = arith.constant 0 : index
    %c0_16 = arith.constant 0 : index
    %22 = vector.load %arg7[%c0_15, %c0_16] : memref<1x128xf32, #tpu.memory_space<vmem>>, vector<1x128xf32>
    %23 = vector.broadcast %22 : vector<1x128xf32> to vector<8x128xf32>
    %24 = arith.subf %21, %23 : vector<8x128xf32>
    %c0_17 = arith.constant 0 : index
    %c0_18 = arith.constant 0 : index
    %25 = vector.load %arg8[%c0_17, %c0_18] : memref<8x128xf32, #tpu.memory_space<vmem>>, vector<8x128xf32>
    tpu.vector_store %arg8[%c0_17, %c0_18], %24 {strides = array<i32>} : memref<8x128xf32, #tpu.memory_space<vmem>>, vector<8x128xf32>,
    return
  }
  func.func @transform_0(%arg0: i32) -> (i32, i32) {
    %c0_i32 = arith.constant 0 : i32
    %c0_i32_0 = arith.constant 0 : i32
    return %arg0, %c0_i32 : i32, i32
  }
  func.func @transform_1(%arg0: i32) -> (i32, i32) {
    %c0_i32 = arith.constant 0 : i32
    %c0_i32_0 = arith.constant 0 : i32
    %c0_i32_1 = arith.constant 0 : i32
    return %c0_i32, %c0_i32_0 : i32, i32
  }
  func.func @transform_2(%arg0: i32) -> (i32, i32) {
    %c0_i32 = arith.constant 0 : i32
    %c0_i32_0 = arith.constant 0 : i32
    %c0_i32_1 = arith.constant 0 : i32
    return %c0_i32, %c0_i32_0 : i32, i32
  }
  func.func @transform_3(%arg0: i32) -> (i32, i32) {
    %c0_i32 = arith.constant 0 : i32
    %c0_i32_0 = arith.constant 0 : i32
    %c0_i32_1 = arith.constant 0 : i32
    return %c0_i32, %c0_i32_0 : i32, i32
  }
  func.func @transform_4(%arg0: i32) -> (i32, i32) {
    %c0_i32 = arith.constant 0 : i32
    %c0_i32_0 = arith.constant 0 : i32
    %c0_i32_1 = arith.constant 0 : i32
    return %c0_i32, %c0_i32_0 : i32, i32
  }
  func.func @transform_5(%arg0: i32) -> (i32, i32) {
    %c0_i32 = arith.constant 0 : i32
    %c0_i32_0 = arith.constant 0 : i32
    %c0_i32_1 = arith.constant 0 : i32
    return %c0_i32, %c0_i32_0 : i32, i32
  }
  func.func @transform_6(%arg0: i32) -> (i32, i32) {
    %c0_i32 = arith.constant 0 : i32
    %c0_i32_0 = arith.constant 0 : i32
    %c0_i32_1 = arith.constant 0 : i32
    return %c0_i32, %c0_i32_0 : i32, i32
  }
  func.func @transform_7(%arg0: i32) -> (i32, i32) {
    %c0_i32 = arith.constant 0 : i32
    %c0_i32_0 = arith.constant 0 : i32
    return %arg0, %c0_i32 : i32, i32
  }
}

</mosaic_0001>

<bundles_post_ra>
// kernel: tpu_custom_call.1
= control target key start
LH: loop header
LB: loop body
LE: loop exit
PB: predicated region body
PF: predicated region fallthrough
CT: control target
= control target key end

     0   :  { %12 = vsyncpa [#allocation3], 0  ;;  %s1619_s0 = inlined_call_operand.hbm [shape: bf16[8,1024], index: 0, kind: input, shape index: {}]   ;;  %s1620_s1 = inlined_call_operand.hbm [shape: bf16[1024,128], index: 1, kind: input, shape index: {}]   ;;  %s1621_s2 = inlined_call_operand.vmem [shape: f32[1,128], index: 2, kind: input, shape index: {}]   ;;  %s1622_s3 = inlined_call_operand.hbm [shape: bf16[128,128], index: 3, kind: input, shape index: {}]   ;;  %s1623_s4 = inlined_call_operand.vmem [shape: f32[1,128], index: 4, kind: input, shape index: {}]   ;;  %s1624_s5 = inlined_call_operand.hbm [shape: bf16[128,128], index: 5, kind: input, shape index: {}]   ;;  %s1625_s6 = inlined_call_operand.vmem [shape: f32[1,128], index: 6, kind: input, shape index: {}]   ;;  %s1626_s7 = inlined_call_operand.hbm [shape: f32[8,128], index: 7, kind: output, shape index: {}]  }
   0x1   :  { %13 = vsyncpa [#allocation6], 0 }
   0x2   :  { %14 = vsyncpa [#allocation9], 0 }
   0x3   :  { %15 = vsyncpa [#allocation4], 0  ;;  %s1492_s24 = smov [#allocation5]   ;;  %s1374_s28 = scalar_lea.hbm %s1620_s1, 8192 }
   0x4   :  { %s31_s25 = sshll.u32 %s1492_s24, 4  ;;  %p1375_p0 = scmp.ne.s32.totalorder %s1620_s1, %s1374_s28  ;;  %s32_s25 = int_to_ptr.vmem [resolvable:$true] %s31_s25 }
   0x5   :  { %p1378_p1 = scmp.lt.u32.totalorder %s1374_s28, %s1620_s1 }
   0x7   :  { %p1380_p2 = pnand %p1378_p1, %p1375_p0 }
   0x9   :  { %1383 = shalt.err (!%p1380_p2)
}
   0xa   :  { %s1384_s10 = scalar_lea.vmem %s32_s25, 8192  ;;  %p1389_p4 = scmp.lt.s32.totalorder %s32_s25, %s32_s25 }
   0xb   :  { %p1385_p3 = scmp.ne.s32.totalorder %s32_s25, %s1384_s10  ;;  %p1390_p5 = scmp.lt.s32.totalorder %s1384_s10, %s1384_s10 }
   0xd   :  { %p1391_p6 = por %p1390_p5, %p1389_p4 }
   0xf   :  { %p1392_p7 = pnand %p1391_p6, %p1385_p3 }
  0x11   :  { %1395 = shalt.err (!%p1392_p7)
}
  0x12   :  { %s1493_s11 = smov 64   ;;  %s1494_s12 = smov 4  }
  0x13   :  { %37 = dma.hbm_to_vmem [thread:$0]  %s1620_s1, 8192, %s32_s25, [#allocation6], %s1493_s11, %s1493_s11, %s1494_s12  }
  0x14   :  { %s1495_s15 = smov [#allocation2]   ;;  %s1496_s17 = smov [#allocation7]  }
  0x15   :  { %s22_s16 = sshll.u32 %s1495_s15, 4  ;;  %s45_s18 = sshll.u32 %s1496_s17, 4  ;;  %s23_s16 = int_to_ptr.vmem [resolvable:$true] %s22_s16  ;;  %s46_s18 = int_to_ptr.vmem [resolvable:$true] %s45_s18 }
  0x16   :  { %s1396_s21 = scalar_lea.hbm %s1619_s0, 512 }
  0x17   :  { %p1397_p8 = scmp.ne.s32.totalorder %s1619_s0, %s1396_s21  ;;  %p1400_p9 = scmp.lt.u32.totalorder %s1396_s21, %s1619_s0 }
  0x19   :  { %p1402_p10 = pnand %p1400_p9, %p1397_p8 }
  0x1b   :  { %1405 = shalt.err (!%p1402_p10)
}
  0x1c   :  { %s1406_s1 = scalar_lea.vmem %s23_s16, 512  ;;  %p1411_p12 = scmp.lt.s32.totalorder %s23_s16, %s23_s16 }
  0x1d   :  { %p1407_p11 = scmp.ne.s32.totalorder %s23_s16, %s1406_s1  ;;  %p1412_p13 = scmp.lt.s32.totalorder %s1406_s1, %s1406_s1 }
  0x1f   :  { %p1413_p0 = por %p1412_p13, %p1411_p12 }
  0x21   :  { %p1414_p1 = pnand %p1413_p0, %p1407_p11 }
  0x23   :  { %1417 = shalt.err (!%p1414_p1)
}
  0x24   :  { %25 = dma.hbm_to_vmem [thread:$0]  %s1619_s0, 512, %s23_s16, [#allocation3]  }
  0x25   :  { %s1418_s30 = scalar_lea.hbm %s1622_s3, 1024 }
  0x26   :  { %p1419_p2 = scmp.ne.s32.totalorder %s1622_s3, %s1418_s30  ;;  %p1422_p3 = scmp.lt.u32.totalorder %s1418_s30, %s1622_s3 }
  0x28   :  { %p1424_p4 = pnand %p1422_p3, %p1419_p2 }
  0x2a   :  { %1427 = shalt.err (!%p1424_p4)
}
  0x2b   :  { %s1428_s14 = scalar_lea.vmem %s46_s18, 1024  ;;  %p1433_p6 = scmp.lt.s32.totalorder %s46_s18, %s46_s18 }
  0x2c   :  { %p1429_p5 = scmp.ne.s32.totalorder %s46_s18, %s1428_s14  ;;  %p1434_p7 = scmp.lt.s32.totalorder %s1428_s14, %s1428_s14 }
  0x2e   :  { %p1435_p8 = por %p1434_p7, %p1433_p6 }
  0x30   :  { %p1436_p9 = pnand %p1435_p8, %p1429_p5 }
  0x32   :  { %1439 = shalt.err (!%p1436_p9)
}
  0x33   :  { %51 = dma.hbm_to_vmem [thread:$0]  %s1622_s3, 1024, %s46_s18, [#allocation6], %s1493_s11, %s1493_s11, %s1494_s12  }
  0x34   :  { %s1497_s16 = smov [#allocation8]   ;;  %s1440_s21 = scalar_lea.hbm %s1624_s5, 1024 }
  0x35   :  { %s59_s17 = sshll.u32 %s1497_s16, 4  ;;  %p1441_p10 = scmp.ne.s32.totalorder %s1624_s5, %s1440_s21  ;;  %s60_s17 = int_to_ptr.vmem [resolvable:$true] %s59_s17 }
  0x36   :  { %p1444_p11 = scmp.lt.u32.totalorder %s1440_s21, %s1624_s5 }
  0x38   :  { %p1446_p12 = pnand %p1444_p11, %p1441_p10 }
  0x3a   :  { %1449 = shalt.err (!%p1446_p12)
}
  0x3b   :  { %s1450_s1 = scalar_lea.vmem %s60_s17, 1024  ;;  %p1455_p0 = scmp.lt.s32.totalorder %s60_s17, %s60_s17 }
  0x3c   :  { %p1451_p13 = scmp.ne.s32.totalorder %s60_s17, %s1450_s1  ;;  %p1456_p1 = scmp.lt.s32.totalorder %s1450_s1, %s1450_s1 }
  0x3e   :  { %p1457_p2 = por %p1456_p1, %p1455_p0 }
  0x40   :  { %p1458_p3 = pnand %p1457_p2, %p1451_p13 }
  0x42   :  { %1461 = shalt.err (!%p1458_p3)
}
  0x43   :  { %65 = dma.hbm_to_vmem [thread:$0]  %s1624_s5, 1024, %s60_s17, [#allocation9], %s1493_s11, %s1493_s11, %s1494_s12  }
  0x44   :  { %1484 = dma.done.wait [#allocation3], 512  }
  0x45   :  { %1485 = vsyncadd [#allocation3], 4294966784 }
  0x46   :  { %1486 = dma.done.wait [#allocation6], 9216  }
  0x47   :  { %1487 = vsyncadd [#allocation6], 4294958080 }
  0x48   :  { %1488 = dma.done.wait [#allocation9], 1024  }
  0x49   :  { %1489 = vsyncadd [#allocation9], 4294966272  ;;  %v1286_v0 = vld [vmem:[#allocation5 + $0x40] sm:$0xff]   ;;  %v1290_v4 = vld [vmem:[#allocation5 + $0x48] sm:$0xff]   ;;  %vm1499_vm0 = vmmov 0   ;;  %s1500_s28 = smov [#allocation10]  }
  0x4a   :  { %v1287_v1 = vld [vmem:[#allocation5 + $0xc0] sm:$0xff]   ;;  %1131 = vmatprep.subr.bf16.mxu0 %v1286_v0  ;;  %v1291_v5 = vld [vmem:[#allocation5 + $0xc8] sm:$0xff]   ;;  %v1294_v8 = vld [vmem:[#allocation5 + $0x50] sm:$0xff]   ;;  %s1029_s29 = sshll.u32 %s1500_s28, 4  ;;  %s1030_s29 = int_to_ptr.vmem [resolvable:$true] %s1029_s29 }
  0x4b   :  { %v1288_v2 = vld [vmem:[#allocation5] sm:$0xff]   ;;  %1153 = vmatprep.subr.bf16.mxu1 %v1287_v1  ;;  %v1292_v6 = vld [vmem:[#allocation5 + $0x8] sm:$0xff]   ;;  %v1295_v9 = vld [vmem:[#allocation5 + $0xd0] sm:$0xff]   ;;  %p1467_p5 = scmp.lt.s32.totalorder %s1030_s29, %s1030_s29 }
  0x4c   :  { %v1289_v3 = vld [vmem:[#allocation5 + $0x80] sm:$0xff]   ;;  %1132 = vmatpush3.bf16.msra.mxu0 %v1288_v2  ;;  %v1293_v7 = vld [vmem:[#allocation5 + $0x88] sm:$0xff]   ;;  %v1296_v10 = vld [vmem:[#allocation5 + $0x10] sm:$0xff]  }
  0x4d   :  { %1154 = vmatpush3.bf16.msra.mxu1 %v1289_v3  ;;  %1133 = vmatprep.subr.bf16.mxu0 %v1290_v4  ;;  %v1297_v11 = vld [vmem:[#allocation5 + $0x90] sm:$0xff]   ;;  %v1298_v12 = vld [vmem:[#allocation5 + $0x58] sm:$0xff]   ;;  %v1302_v16 = vld [vmem:[#allocation5 + $0x60] sm:$0xff]  }
  0x4e   :  { %1155 = vmatprep.subr.bf16.mxu1 %v1291_v5  ;;  %v1299_v13 = vld [vmem:[#allocation5 + $0xd8] sm:$0xff]   ;;  %v1303_v17 = vld [vmem:[#allocation5 + $0xe0] sm:$0xff]   ;;  %v1306_v20 = vld [vmem:[#allocation5 + $0x68] sm:$0xff]  }
  0x4f   :  { %v1300_v14 = vld [vmem:[#allocation5 + $0x18] sm:$0xff]   ;;  %v1304_v18 = vld [vmem:[#allocation5 + $0x20] sm:$0xff]   ;;  %v1307_v21 = vld [vmem:[#allocation5 + $0xe8] sm:$0xff]  }
  0x50   :  { %1134 = vmatpush3.bf16.msra.mxu0 %v1292_v6  ;;  %v1301_v15 = vld [vmem:[#allocation5 + $0x98] sm:$0xff]   ;;  %v1305_v19 = vld [vmem:[#allocation5 + $0xa0] sm:$0xff]   ;;  %v1308_v22 = vld [vmem:[#allocation5 + $0x28] sm:$0xff]  }
  0x51   :  { %1156 = vmatpush3.bf16.msra.mxu1 %v1293_v7  ;;  %1135 = vmatprep.subr.bf16.mxu0 %v1294_v8  ;;  %v1309_v23 = vld [vmem:[#allocation5 + $0xa8] sm:$0xff]   ;;  %v1310_v24 = vld [vmem:[#allocation5 + $0x70] sm:$0xff]   ;;  %v1314_v28 = vld [vmem:[#allocation5 + $0x78] sm:$0xff]  }
  0x52   :  { %1157 = vmatprep.subr.bf16.mxu1 %v1295_v9  ;;  %v1311_v25 = vld [vmem:[#allocation5 + $0xf0] sm:$0xff]   ;;  %v1315_v29 = vld [vmem:[#allocation5 + $0xf8] sm:$0xff]   ;;  %v81_v32 = vld [vmem:[#allocation2] sm:$0xff] }
  0x53   :  { %v1312_v26 = vld [vmem:[#allocation5 + $0x30] sm:$0xff]   ;;  %v1316_v30 = vld [vmem:[#allocation5 + $0x38] sm:$0xff]   ;;  %v82_v33 = vld [vmem:[#allocation2 + $0x8] sm:$0xff]  ;;  %v1041_v34 = vcombine.low %v81_v32, %v81_v32  ;;  %v1042_v35 = vcombine.high %v81_v32, %v81_v32 }
  0x54   :  { %1136 = vmatpush3.bf16.msra.mxu0 %v1296_v10  ;;  %v1313_v27 = vld [vmem:[#allocation5 + $0xb0] sm:$0xff]   ;;  %v1317_v31 = vld [vmem:[#allocation5 + $0xb8] sm:$0xff]   ;;  %v1043_v36 = vcombine.low %v82_v33, %v82_v33  ;;  %v1044_v37 = vcombine.high %v82_v33, %v82_v33  ;;  %v1322_v38 = vld [vmem:[#allocation5 + $0x140] sm:$0xff]  }
  0x55   :  { %1158 = vmatpush3.bf16.msra.mxu1 %v1297_v11  ;;  %1137 = vmatprep.subr.bf16.mxu0 %v1298_v12  ;;  %v1323_v39 = vld [vmem:[#allocation5 + $0x1c0] sm:$0xff]   ;;  %v1326_v42 = vld [vmem:[#allocation5 + $0x148] sm:$0xff]   ;;  %v1330_v46 = vld [vmem:[#allocation5 + $0x150] sm:$0xff]  }
  0x56   :  { %1159 = vmatprep.subr.bf16.mxu1 %v1299_v13  ;;  %664 = vmatprep.mubr.bf16.mxu0 %v1042_v35  ;;  %v1324_v40 = vld [vmem:[#allocation5 + $0x100] sm:$0xff]   ;;  %v1327_v43 = vld [vmem:[#allocation5 + $0x1c8] sm:$0xff]   ;;  %v1331_v47 = vld [vmem:[#allocation5 + $0x1d0] sm:$0xff]   ;;  %v1498_v13 = vmov 0.0  }
  0x57   :  { %704 = vmatprep.mubr.bf16.mxu1 %v1044_v37  ;;  %v1325_v41 = vld [vmem:[#allocation5 + $0x180] sm:$0xff]   ;;  %v1328_v44 = vld [vmem:[#allocation5 + $0x108] sm:$0xff]   ;;  %v1332_v48 = vld [vmem:[#allocation5 + $0x110] sm:$0xff]  }
  0x58   :  { %1138 = vmatpush3.bf16.msra.mxu0 %v1300_v14  ;;  %v1329_v45 = vld [vmem:[#allocation5 + $0x188] sm:$0xff]   ;;  %v1333_v49 = vld [vmem:[#allocation5 + $0x190] sm:$0xff]   ;;  %v1334_v50 = vld [vmem:[#allocation5 + $0x158] sm:$0xff]  }
  0x59   :  { %1160 = vmatpush3.bf16.msra.mxu1 %v1301_v15  ;;  %1139 = vmatprep.subr.bf16.mxu0 %v1302_v16  ;;  %v1335_v51 = vld [vmem:[#allocation5 + $0x1d8] sm:$0xff]   ;;  %v1338_v54 = vld [vmem:[#allocation5 + $0x160] sm:$0xff]   ;;  %v1342_v58 = vld [vmem:[#allocation5 + $0x168] sm:$0xff]  }
  0x5a   :  { %1161 = vmatprep.subr.bf16.mxu1 %v1303_v17  ;;  %v1336_v52 = vld [vmem:[#allocation5 + $0x118] sm:$0xff]   ;;  %v1339_v55 = vld [vmem:[#allocation5 + $0x1e0] sm:$0xff]   ;;  %v1343_v59 = vld [vmem:[#allocation5 + $0x1e8] sm:$0xff]  }
  0x5b   :  { %v1337_v53 = vld [vmem:[#allocation5 + $0x198] sm:$0xff]   ;;  %v1340_v56 = vld [vmem:[#allocation5 + $0x120] sm:$0xff]   ;;  %v1344_v60 = vld [vmem:[#allocation5 + $0x128] sm:$0xff]  }
  0x5c   :  { %1140 = vmatpush3.bf16.msra.mxu0 %v1304_v18  ;;  %v1341_v57 = vld [vmem:[#allocation5 + $0x1a0] sm:$0xff]   ;;  %v1345_v61 = vld [vmem:[#allocation5 + $0x1a8] sm:$0xff]   ;;  %v1346_v62 = vld [vmem:[#allocation5 + $0x170] sm:$0xff]  }
  0x5d   :  { %1162 = vmatpush3.bf16.msra.mxu1 %v1305_v19  ;;  %1141 = vmatprep.subr.bf16.mxu0 %v1306_v20  ;;  %v1347_v63 = vld [vmem:[#allocation5 + $0x1f0] sm:$0xff]   ;;  %v1350_v2 = vld [vmem:[#allocation5 + $0x178] sm:$0xff]   ;;  %v1358_v12 = vld [vmem:[#allocation7] sm:$0xff]  }
  0x5e   :  { %1163 = vmatprep.subr.bf16.mxu1 %v1307_v21  ;;  %v1348_v0 = vld [vmem:[#allocation5 + $0x130] sm:$0xff]   ;;  %v1351_v3 = vld [vmem:[#allocation5 + $0x1f8] sm:$0xff]   ;;  %v1359_v14 = vld [vmem:[#allocation7 + $0x8] sm:$0xff]  }
  0x5f   :  { %v1349_v1 = vld [vmem:[#allocation5 + $0x1b0] sm:$0xff]   ;;  %v1352_v4 = vld [vmem:[#allocation5 + $0x138] sm:$0xff]   ;;  %v1362_v17 = vld [vmem:[#allocation7 + $0x20] sm:$0xff]  }
  0x60   :  { %1142 = vmatpush3.bf16.msra.mxu0 %v1308_v22  ;;  %v1353_v5 = vld [vmem:[#allocation5 + $0x1b8] sm:$0xff]   ;;  %v83_v6 = vld [vmem:[#allocation2 + $0x10] sm:$0xff]  ;;  %v1363_v18 = vld [vmem:[#allocation7 + $0x28] sm:$0xff]  }
  0x61   :  { %1164 = vmatpush3.bf16.msra.mxu1 %v1309_v23  ;;  %1143 = vmatprep.subr.bf16.mxu0 %v1310_v24  ;;  %v1045_v7 = vcombine.low %v83_v6, %v83_v6  ;;  %v1046_v8 = vcombine.high %v83_v6, %v83_v6  ;;  %v84_v9 = vld [vmem:[#allocation2 + $0x18] sm:$0xff]  ;;  %v1360_v15 = vld [vmem:[#allocation7 + $0x10] sm:$0xff]   ;;  %v1366_v21 = vld [vmem:[#allocation8] sm:$0xff]  }
  0x62   :  { %1165 = vmatprep.subr.bf16.mxu1 %v1311_v25  ;;  %v1047_v10 = vcombine.low %v84_v9, %v84_v9  ;;  %v1048_v11 = vcombine.high %v84_v9, %v84_v9  ;;  %v1361_v16 = vld [vmem:[#allocation7 + $0x18] sm:$0xff]   ;;  %v1364_v19 = vld [vmem:[#allocation7 + $0x30] sm:$0xff]   ;;  %v1367_v22 = vld [vmem:[#allocation8 + $0x8] sm:$0xff]  }
  0x63   :  { %v1365_v20 = vld [vmem:[#allocation7 + $0x38] sm:$0xff]   ;;  %v1368_v23 = vld [vmem:[#allocation8 + $0x10] sm:$0xff]   ;;  %v1370_v25 = vld [vmem:[#allocation8 + $0x20] sm:$0xff]  }
  0x64   :  { %1144 = vmatpush3.bf16.msra.mxu0 %v1312_v26  ;;  %v1369_v24 = vld [vmem:[#allocation8 + $0x18] sm:$0xff]   ;;  %v1371_v26 = vld [vmem:[#allocation8 + $0x28] sm:$0xff]  }
  0x65   :  { %1166 = vmatpush3.bf16.msra.mxu1 %v1313_v27  ;;  %1145 = vmatprep.subr.bf16.mxu0 %v1314_v28  ;;  %v1372_v27 = vld [vmem:[#allocation8 + $0x30] sm:$0xff]  }
  0x66   :  { %1167 = vmatprep.subr.bf16.mxu1 %v1315_v29 }
  0x68   :  { %1146 = vmatpush3.bf16.msra.mxu0 %v1316_v30  ;;  %v1040_v30 = vld [vmem:[%s1621_s2] ss:$0 sm:$0xff] }
  0x69   :  { %1168 = vmatpush3.bf16.msra.mxu1 %v1317_v31  ;;  %1175 = vmatprep.subr.bf16.mxu0 %v1322_v38 }
  0x6a   :  { %1197 = vmatprep.subr.bf16.mxu1 %v1323_v39 }
  0x6b   :  { %665 = vmatmul.mubr.bf16.vlgmr.msra.gmra.mrb[0].mxu0 %v1041_v34 }
  0x6c   :  { %705 = vmatmul.mubr.bf16.vlgmr.msra.gmra.mrb[0].mxu1 %v1043_v36  ;;  %1176 = vmatpush3.bf16.msra.mxu0 %v1324_v40 }
  0x6d   :  { %1198 = vmatpush3.bf16.msra.mxu1 %v1325_v41  ;;  %1177 = vmatprep.subr.bf16.mxu0 %v1326_v42 }
  0x6e   :  { %1199 = vmatprep.subr.bf16.mxu1 %v1327_v43  ;;  %744 = vmatprep.mubr.bf16.mxu0 %v1046_v8 }
  0x6f   :  { %784 = vmatprep.mubr.bf16.mxu1 %v1048_v11 }
  0x70   :  { %1178 = vmatpush3.bf16.msra.mxu0 %v1328_v44 }
  0x71   :  { %1200 = vmatpush3.bf16.msra.mxu1 %v1329_v45  ;;  %1179 = vmatprep.subr.bf16.mxu0 %v1330_v46 }
  0x72   :  { %1201 = vmatprep.subr.bf16.mxu1 %v1331_v47 }
  0x74   :  { %1180 = vmatpush3.bf16.msra.mxu0 %v1332_v48 }
  0x75   :  { %1202 = vmatpush3.bf16.msra.mxu1 %v1333_v49  ;;  %1181 = vmatprep.subr.bf16.mxu0 %v1334_v50 }
  0x76   :  { %1203 = vmatprep.subr.bf16.mxu1 %v1335_v51 }
  0x78   :  { %1182 = vmatpush3.bf16.msra.mxu0 %v1336_v52 }
  0x79   :  { %1204 = vmatpush3.bf16.msra.mxu1 %v1337_v53  ;;  %1183 = vmatprep.subr.bf16.mxu0 %v1338_v54 }
  0x7a   :  { %1205 = vmatprep.subr.bf16.mxu1 %v1339_v55  ;;  %v1373_v55 = vld [vmem:[#allocation8 + $0x38] sm:$0xff]  }
  0x7c   :  { %1184 = vmatpush3.bf16.msra.mxu0 %v1340_v56  ;;  %v1113_v56 = vld [vmem:[%s1623_s4] ss:$0 sm:$0xff]  ;;  %s1462_s4 = scalar_lea.vmem %s1030_s29, 128 }
  0x7d   :  { %1206 = vmatpush3.bf16.msra.mxu1 %v1341_v57  ;;  %1185 = vmatprep.subr.bf16.mxu0 %v1342_v58  ;;  %p1463_p4 = scmp.ne.s32.totalorder %s1030_s29, %s1462_s4  ;;  %p1468_p6 = scmp.lt.s32.totalorder %s1462_s4, %s1462_s4 }
  0x7e   :  { %1207 = vmatprep.subr.bf16.mxu1 %v1343_v59 }
  0x7f   :  { %p1469_p7 = por %p1468_p6, %p1467_p5 }
  0x80   :  { %1186 = vmatpush3.bf16.msra.mxu0 %v1344_v60 }
  0x81   :  { %1208 = vmatpush3.bf16.msra.mxu1 %v1345_v61  ;;  %1187 = vmatprep.subr.bf16.mxu0 %v1346_v62  ;;  %p1470_p8 = pnand %p1469_p7, %p1463_p4 }
  0x82   :  { %1209 = vmatprep.subr.bf16.mxu1 %v1347_v63 }
  0x84   :  { %1188 = vmatpush3.bf16.msra.mxu0 %v1348_v0 }
  0x85   :  { %1210 = vmatpush3.bf16.msra.mxu1 %v1349_v1  ;;  %1189 = vmatprep.subr.bf16.mxu0 %v1350_v2  ;;  %v1130_v2 = vld [vmem:[%s1625_s6] ss:$0 sm:$0xff] }
  0x86   :  { %1211 = vmatprep.subr.bf16.mxu1 %v1351_v3 }
  0x88   :  { %1190 = vmatpush3.bf16.msra.mxu0 %v1352_v4 }
  0x89   :  { %1212 = vmatpush3.bf16.msra.mxu1 %v1353_v5  ;;  %1237 = vmatprep.subr.bf16.mxu0 %v1498_v13 }
  0x8a   :  { %1257 = vmatprep.subr.bf16.mxu1 %v1498_v13 }
  0x8b   :  { %745 = vmatmul.mubr.bf16.vlgmr.msra.gmra.mrb[4].mxu0 %v1045_v7 }
  0x8c   :  { %785 = vmatmul.mubr.bf16.vlgmr.msra.gmra.mrb[4].mxu1 %v1047_v10  ;;  %1238 = vmatpush3.bf16.msra.mxu0 %v1358_v12 }
  0x8d   :  { %1239 = vmatprep.subr.bf16.mxu0 %v1498_v13  ;;  %1253 = vmatprep.mubr.msk.bf16.mxu0 %vm1499_vm0, %v1498_v13 }
  0x8e   :  { %1273 = vmatprep.mubr.msk.bf16.mxu1 %vm1499_vm0, %v1498_v13  ;;  %1258 = vmatpush3.bf16.msra.mxu1 %v1366_v21 }
  0x8f   :  { %1259 = vmatprep.subr.bf16.mxu1 %v1498_v13 }
  0x90   :  { %1240 = vmatpush3.bf16.msra.mxu0 %v1359_v14 }
  0x91   :  { %1241 = vmatprep.subr.bf16.mxu0 %v1498_v13 }
  0x92   :  { %1260 = vmatpush3.bf16.msra.mxu1 %v1367_v22 }
  0x93   :  { %1261 = vmatprep.subr.bf16.mxu1 %v1498_v13 }
  0x94   :  { %1242 = vmatpush3.bf16.msra.mxu0 %v1360_v15 }
  0x95   :  { %1243 = vmatprep.subr.bf16.mxu0 %v1498_v13 }
  0x96   :  { %1262 = vmatpush3.bf16.msra.mxu1 %v1368_v23 }
  0x97   :  { %1263 = vmatprep.subr.bf16.mxu1 %v1498_v13 }
  0x98   :  { %1244 = vmatpush3.bf16.msra.mxu0 %v1361_v16 }
  0x99   :  { %1245 = vmatprep.subr.bf16.mxu0 %v1498_v13 }
  0x9a   :  { %1264 = vmatpush3.bf16.msra.mxu1 %v1369_v24 }
  0x9b   :  { %1265 = vmatprep.subr.bf16.mxu1 %v1498_v13 }
  0x9c   :  { %1246 = vmatpush3.bf16.msra.mxu0 %v1362_v17 }
  0x9d   :  { %1247 = vmatprep.subr.bf16.mxu0 %v1498_v13 }
  0x9e   :  { %1266 = vmatpush3.bf16.msra.mxu1 %v1370_v25 }
  0x9f   :  { %1267 = vmatprep.subr.bf16.mxu1 %v1498_v13 }
  0xa0   :  { %1248 = vmatpush3.bf16.msra.mxu0 %v1363_v18 }
  0xa1   :  { %1249 = vmatprep.subr.bf16.mxu0 %v1498_v13 }
  0xa2   :  { %1268 = vmatpush3.bf16.msra.mxu1 %v1371_v26 }
  0xa3   :  { %1269 = vmatprep.subr.bf16.mxu1 %v1498_v13 }
  0xa4   :  { %1250 = vmatpush3.bf16.msra.mxu0 %v1364_v19 }
  0xa5   :  { %1251 = vmatprep.subr.bf16.mxu0 %v1498_v13 }
  0xa6   :  { %1270 = vmatpush3.bf16.msra.mxu1 %v1372_v27 }
  0xa7   :  { %1271 = vmatprep.subr.bf16.mxu1 %v1498_v13 }
  0xa8   :  { %1252 = vmatpush3.bf16.msra.mxu0 %v1365_v20 }
  0xaa   :  { %1272 = vmatpush3.bf16.msra.mxu1 %v1373_v55 }
 0x13e   :  { %v1147_v28 = vpop.f32.mrb[0].mxu0 }
 0x13f   :  { %v1169_v29 = vpop.f32.mrb[0].mxu1  ;;  %v1148_v31 = vpop.f32.mrb[1].mxu0 }
 0x140   :  { %v1170_v32 = vpop.f32.mrb[1].mxu1  ;;  %v1149_v33 = vadd.f32 %v1148_v31, %v1147_v28  ;;  %v1150_v35 = vpop.f32.mrb[2].mxu0 }
 0x141   :  { %v1171_v34 = vadd.f32 %v1170_v32, %v1169_v29  ;;  %v1172_v36 = vpop.f32.mrb[2].mxu1  ;;  %v1151_v37 = vpop.f32.mrb[3].mxu0 }
 0x142   :  { %v1173_v38 = vpop.f32.mrb[3].mxu1  ;;  %v667_v39 = vadd.f32 %v1149_v33, %v1040_v30 }
 0x144   :  { %v707_v40 = vadd.f32 %v1171_v34, %v667_v39 }
 0x15e   :  { %v1191_v41 = vpop.f32.mrb[4].mxu0 }
 0x15f   :  { %v1213_v42 = vpop.f32.mrb[4].mxu1  ;;  %v1192_v43 = vpop.f32.mrb[5].mxu0 }
 0x160   :  { %v1214_v44 = vpop.f32.mrb[5].mxu1  ;;  %v1193_v45 = vadd.f32 %v1192_v43, %v1191_v41  ;;  %v1194_v47 = vpop.f32.mrb[6].mxu0 }
 0x161   :  { %v1215_v46 = vadd.f32 %v1214_v44, %v1213_v42  ;;  %v1216_v48 = vpop.f32.mrb[6].mxu1  ;;  %v1195_v49 = vpop.f32.mrb[7].mxu0 }
 0x162   :  { %v1217_v50 = vpop.f32.mrb[7].mxu1  ;;  %v747_v51 = vadd.f32 %v1193_v45, %v707_v40 }
 0x164   :  { %v787_v52 = vadd.f32 %v1215_v46, %v747_v51 }
 0x166   :  { %v792_v53 = vmax.f32 %v787_v52, 0.0 }
 0x168   :  { %v793_v54 = vpack.c.bf16 %v792_v53, %v792_v53 }
 0x16a   :  { %1254 = vmatmul.mubr.bf16.vlgmr.msra.gmra.mrb[8].mxu0 %v793_v54 }
 0x23d   :  { %v899_v57 = vpop.f32.mrb[8].mxu0 }
 0x23e   :  { %v900_v58 = vadd.f32 %v1113_v56, %v899_v57  ;;  %v1255_v59 = vpop.f32.mrb[9].mxu0 }
 0x23f   :  { %v902_v60 = vpop.f32.mrb[10].mxu0 }
 0x240   :  { %v908_v61 = vpack.c.bf16 %v900_v58, %v900_v58  ;;  %v1256_v62 = vpop.f32.mrb[11].mxu0  ;;  %v905_v63 = vmul.f32 %v900_v58, %v900_v58 }
 0x242   :  { %906 = vadd.xlane.f32.xlu0 %v905_v63  ;;  %1274 = vmatmul.mubr.bf16.vlgmr.msra.gmra.mrb[8].mxu1 %v908_v61 }
 0x2cf   :  { %v907_v0 = vpop.xlane.xlu0 %906 }
 0x315   :  { %v1007_v1 = vpop.f32.mrb[8].mxu1 }
 0x316   :  { %v1013_v3 = vsub.f32 %v1007_v1, %v907_v0  ;;  %v1275_v4 = vpop.f32.mrb[9].mxu1 }
 0x317   :  { %v1010_v5 = vpop.f32.mrb[10].mxu1 }
 0x318   :  { %v1021_v6 = vsub.f32 %v1013_v3, %v1130_v2  ;;  %v1276_v7 = vpop.f32.mrb[11].mxu1 }
 0x31a   :  { %1022 = vst [vmem:[#allocation10] sm:$0xff] %v1021_v6 }
 0x31b   :  { %1473 = shalt.err (!%p1470_p8)
}
 0x31c   :  { %s1474_s6 = scalar_lea.hbm %s1626_s7, 128 }
 0x31d   :  { %p1475_p9 = scmp.ne.s32.totalorder %s1626_s7, %s1474_s6  ;;  %p1478_p10 = scmp.lt.u32.totalorder %s1474_s6, %s1626_s7 }
 0x31f   :  { %p1480_p11 = pnand %p1478_p10, %p1475_p9 }
 0x321   :  { %1483 = shalt.err (!%p1480_p11)
}
 0x322   :  { %1032 = dma.vmem_to_hbm [thread:$0]  %s1030_s29, 128, %s1626_s7, [#allocation4]  }
 0x323   :  { %1490 = dma.done.wait [#allocation4], 128  }
 0x324   :  { %1491 = vsyncadd [#allocation4], 4294967168 }
 0x325   :  { %1036 = vsyncpa [#allocation3], 1 }
 0x326   :  { %1037 = vsyncpa [#allocation6], 1 }
 0x327   :  { %1038 = vsyncpa [#allocation9], 1 }
 0x328   :  { %1039 = vsyncpa [#allocation4], 1 }

</bundles_post_ra>
